<compile_context>
chip_gen: v7x
topology: tpu7x:2x2x1
jax: 0.10.0
libtpu: 0.0.40
codegen_flags: <defaults>
</compile_context>

<pallas_src>
import functools

import jax
import jax.numpy as jnp
from jax.experimental import pallas as pl
from jax.experimental.pallas import tpu as pltpu


def _patch_embed_kernel(p_ref, w_ref, b_ref, pos_ref, o_ref, acc_ref):
    """One (b, n, e, k) grid step: acc += patch_tile @ W_tile; finalize at k==last."""
    k = pl.program_id(3)

    @pl.when(k == 0)
    def _init():
        acc_ref[...] = jnp.zeros_like(acc_ref)

    acc_ref[...] += jnp.dot(
        p_ref[...], w_ref[...], preferred_element_type=jnp.float32
    )

    @pl.when(k == pl.num_programs(3) - 1)
    def _finalize():
        # bias + positional embedding in f32, single cast at the store.
        o_ref[...] = (acc_ref[...] + b_ref[...] + pos_ref[...]).astype(o_ref.dtype)


def _pick_tile(dim: int, max_tile: int, align: int) -> int:
    """Largest `align`-multiple tile <= max_tile that evenly divides `dim`;
    falls back to the full extent (always legal for BlockSpec)."""
    if dim <= max_tile:
        return dim
    t = (max_tile // align) * align
    while t >= align:
        if dim % t == 0:
            return t
        t -= align
    return dim


@functools.partial(
    jax.jit, static_argnames=("patch_size", "tn_max", "te_max", "tk_max")
)
def patch_embedding(x, conv_w, conv_b, positions, *, patch_size: int,
                    tn_max: int = 512, te_max: int = 512, tk_max: int = 512):
    """out[b, n, :] = conv_w-projected patch n of image b + conv_b + positions[n]."""
    B, C, H, W = x.shape
    P = patch_size
    E = conv_w.shape[0]
    Hp, Wp = H // P, W // P
    Np = Hp * Wp
    K = C * P * P

    # --- im2col: non-overlapping P x P patches (pure layout plumbing in XLA) ---
    # TODO(synk): could be fused into the kernel via strided DMA gathers; kept in
    # the wrapper since it is layout-only and XLA handles it as a cheap copy.
    patches = (
        x.reshape(B, C, Hp, P, Wp, P)
        .transpose(0, 2, 4, 1, 3, 5)          # (B, Hp, Wp, C, P, P)
        .reshape(B, Np, K)
    )
    w = conv_w.reshape(E, K).T                # (K, E), matches (C, P, P) flatten order
    b = conv_b.reshape(1, E)

    # --- tile selection: (8,128)-aligned (or full extent), exact division ---
    TN = _pick_tile(Np, tn_max, 8)            # token rows
    TE = _pick_tile(E, te_max, 128)           # output lanes
    TK = _pick_tile(K, tk_max, 128)           # contraction
    grid = (B, Np // TN, E // TE, K // TK)

    out = pl.pallas_call(
        _patch_embed_kernel,
        out_shape=jax.ShapeDtypeStruct((B, Np, E), x.dtype),
        grid_spec=pltpu.PrefetchScalarGridSpec(
            num_scalar_prefetch=0,
            grid=grid,
            in_specs=[
                # patches: batch dim squeezed, (TN, TK) tile streamed over (n, k)
                pl.BlockSpec((pl.Squeezed(), TN, TK),
                             lambda b_, n, e, k: (b_, n, k)),
                # projection weight: (TK, TE) tile streamed over (k, e)
                pl.BlockSpec((TK, TE), lambda b_, n, e, k: (k, e)),
                # bias: lane tile only (resident across n, k, b)
                pl.BlockSpec((1, TE), lambda b_, n, e, k: (0, e)),
                # positional embedding: shared across batch, indexed by (n, e)
                pl.BlockSpec((TN, TE), lambda b_, n, e, k: (n, e)),
            ],
            out_specs=pl.BlockSpec((pl.Squeezed(), TN, TE),
                                   lambda b_, n, e, k: (b_, n, e)),
            scratch_shapes=[pltpu.VMEM((TN, TE), jnp.float32)],
        ),
        compiler_params=pltpu.CompilerParams(
            # batch / token / emb tiles are independent -> parallel (v7x 2-TC
            # sharding); K is the contraction -> arbitrary, kept innermost.
            dimension_semantics=("parallel", "parallel", "parallel", "arbitrary"),
            vmem_limit_bytes=48 * 1024 * 1024,
        ),
    )(patches, w, b, positions)
    return out


if __name__ == "__main__":
    key = jax.random.PRNGKey(0)
    kx, kw, kb, kp = jax.random.split(key, 4)

    # Small shapes consistent with the module (scaled-down ViT patch embedding):
    # in_channels=8, patch_size=4, emb_size=256, img_size=16
    B, C, IMG, P, E = 2, 8, 16, 4, 256
    Hp = IMG // P
    Np = Hp * Hp              # 16 patches
    K = C * P * P             # 128 (lane-aligned contraction)

    x = jax.random.normal(kx, (B, C, IMG, IMG), dtype=jnp.float32)
    conv_w = jax.random.normal(kw, (E, C, P, P), dtype=jnp.float32) * 0.02
    conv_b = jax.random.normal(kb, (E,), dtype=jnp.float32) * 0.02
    positions = jax.random.normal(kp, (Np, E), dtype=jnp.float32)

    out = patch_embedding(x, conv_w, conv_b, positions, patch_size=P)
    out = jax.block_until_ready(out)
    assert out.shape == (B, Np, E)

    # Reference: the actual Conv2d(stride=kernel=P) + rearrange + positions.
    ref = jax.lax.conv_general_dilated(
        x, conv_w, window_strides=(P, P), padding="VALID",
        dimension_numbers=("NCHW", "OIHW", "NCHW"),
        precision=jax.lax.Precision.HIGHEST,
    )
    ref = ref + conv_b[None, :, None, None]
    ref = ref.reshape(B, E, Np).transpose(0, 2, 1) + positions[None]

    assert jnp.allclose(out, ref, atol=1e-3, rtol=1e-3), "mismatch vs reference"
    print("KERNEL_OK")
</pallas_src>

<mosaic_0001>
module attributes {stable_mosaic.version = 11 : i64} {
  func.func @_patch_embed_kernel(%arg0: i32, %arg1: i32, %arg2: i32, %arg3: i32, %arg4: memref<1x16x128xf32, #tpu.memory_space<vmem>>, %arg5: memref<128x256xf32, #tpu.memory_space<vmem>>, %arg6: memref<1x256xf32, #tpu.memory_space<vmem>>, %arg7: memref<16x256xf32, #tpu.memory_space<vmem>>, %arg8: memref<1x16x256xf32, #tpu.memory_space<vmem>>, %arg9: memref<16x256xf32, #tpu.memory_space<vmem>>) attributes {dimension_semantics = [#tpu.dimension_semantics<parallel>, #tpu.dimension_semantics<parallel>, #tpu.dimension_semantics<parallel>, #tpu.dimension_semantics<arbitrary>], iteration_bounds = array<i64: 2, 1, 1, 1>, scalar_prefetch = 0 : i64, scratch_operands = 1 : i64, tpu.core_type = #tpu.core_type<tc>, window_params = [{transform_indices = @transform_0, window_bounds = array<i64: 1, 16, 128>}, {transform_indices = @transform_1, window_bounds = array<i64: 128, 256>}, {transform_indices = @transform_2, window_bounds = array<i64: 1, 256>}, {transform_indices = @transform_3, window_bounds = array<i64: 16, 256>}, {transform_indices = @transform_4, window_bounds = array<i64: 1, 16, 256>}]} {
    %c0_i32 = arith.constant 0 : i32
    %0 = arith.cmpi eq, %arg3, %c0_i32 : i32
    %1 = arith.extui %0 : i1 to i32
    %c0_i32_0 = arith.constant 0 : i32
    %2 = arith.cmpi ne, %1, %c0_i32_0 : i32
    scf.if %2 {
      %cst_11 = arith.constant 0.000000e+00 : f32
      %13 = vector.broadcast %cst_11 : f32 to vector<16x256xf32>
      %c0_12 = arith.constant 0 : index
      %c0_13 = arith.constant 0 : index
      %14 = vector.load %arg9[%c0_12, %c0_13] : memref<16x256xf32, #tpu.memory_space<vmem>>, vector<16x256xf32>
      tpu.vector_store %arg9[%c0_12, %c0_13], %13 {strides = array<i32>} : memref<16x256xf32, #tpu.memory_space<vmem>>, vector<16x256xf32>,
    } else {
    }
    %c0 = arith.constant 0 : index
    %c0_1 = arith.constant 0 : index
    %3 = vector.load %arg9[%c0, %c0_1] : memref<16x256xf32, #tpu.memory_space<vmem>>, vector<16x256xf32>
    %c0_2 = arith.constant 0 : index
    %c0_3 = arith.constant 0 : index
    %c0_4 = arith.constant 0 : index
    %4 = vector.load %arg4[%c0_2, %c0_3, %c0_4] : memref<1x16x128xf32, #tpu.memory_space<vmem>>, vector<1x16x128xf32>
    %5 = vector.shape_cast %4 : vector<1x16x128xf32> to vector<16x128xf32>
    %c0_5 = arith.constant 0 : index
    %c0_6 = arith.constant 0 : index
    %6 = vector.load %arg5[%c0_5, %c0_6] : memref<128x256xf32, #tpu.memory_space<vmem>>, vector<128x256xf32>
    %cst = arith.constant dense<0.000000e+00> : vector<16x256xf32>
    %7 = tpu.matmul %5, %6, %cst {dimension_numbers = #tpu.dot_dimension_numbers<[1], [0], [0], [1], [0, 0, 1, 1], [], []>} : vector<16x128xf32>, vector<128x256xf32>, vector<16x256xf32> -> vector<16x256xf32>
    %8 = arith.addf %3, %7 : vector<16x256xf32>
    %c0_7 = arith.constant 0 : index
    %c0_8 = arith.constant 0 : index
    %9 = vector.load %arg9[%c0_7, %c0_8] : memref<16x256xf32, #tpu.memory_space<vmem>>, vector<16x256xf32>
    tpu.vector_store %arg9[%c0_7, %c0_8], %8 {strides = array<i32>} : memref<16x256xf32, #tpu.memory_space<vmem>>, vector<16x256xf32>,
    %c0_i32_9 = arith.constant 0 : i32
    %10 = arith.cmpi eq, %arg3, %c0_i32_9 : i32
    %11 = arith.extui %10 : i1 to i32
    %c0_i32_10 = arith.constant 0 : i32
    %12 = arith.cmpi ne, %11, %c0_i32_10 : i32
    scf.if %12 {
      %c0_11 = arith.constant 0 : index
      %c0_12 = arith.constant 0 : index
      %13 = vector.load %arg9[%c0_11, %c0_12] : memref<16x256xf32, #tpu.memory_space<vmem>>, vector<16x256xf32>
      %c0_13 = arith.constant 0 : index
      %c0_14 = arith.constant 0 : index
      %14 = vector.load %arg6[%c0_13, %c0_14] : memref<1x256xf32, #tpu.memory_space<vmem>>, vector<1x256xf32>
      %15 = vector.broadcast %14 : vector<1x256xf32> to vector<16x256xf32>
      %16 = arith.addf %13, %15 : vector<16x256xf32>
      %c0_15 = arith.constant 0 : index
      %c0_16 = arith.constant 0 : index
      %17 = vector.load %arg7[%c0_15, %c0_16] : memref<16x256xf32, #tpu.memory_space<vmem>>, vector<16x256xf32>
      %18 = arith.addf %16, %17 : vector<16x256xf32>
      %c0_17 = arith.constant 0 : index
      %c0_18 = arith.constant 0 : index
      %c0_19 = arith.constant 0 : index
      %19 = vector.load %arg8[%c0_17, %c0_18, %c0_19] : memref<1x16x256xf32, #tpu.memory_space<vmem>>, vector<1x16x256xf32>
      %20 = vector.shape_cast %19 : vector<1x16x256xf32> to vector<16x256xf32>
      %21 = vector.shape_cast %18 : vector<16x256xf32> to vector<1x16x256xf32>
      tpu.vector_store %arg8[%c0_17, %c0_18, %c0_19], %21 {strides = array<i32>} : memref<1x16x256xf32, #tpu.memory_space<vmem>>, vector<1x16x256xf32>,
    } else {
    }
    return
  }
  func.func @transform_0(%arg0: i32, %arg1: i32, %arg2: i32, %arg3: i32) -> (i32, i32, i32) {
    %c0_i32 = arith.constant 0 : i32
    return %arg0, %arg1, %arg3 : i32, i32, i32
  }
  func.func @transform_1(%arg0: i32, %arg1: i32, %arg2: i32, %arg3: i32) -> (i32, i32) {
    %c0_i32 = arith.constant 0 : i32
    return %arg3, %arg2 : i32, i32
  }
  func.func @transform_2(%arg0: i32, %arg1: i32, %arg2: i32, %arg3: i32) -> (i32, i32) {
    %c0_i32 = arith.constant 0 : i32
    %c0_i32_0 = arith.constant 0 : i32
    return %c0_i32, %arg2 : i32, i32
  }
  func.func @transform_3(%arg0: i32, %arg1: i32, %arg2: i32, %arg3: i32) -> (i32, i32) {
    %c0_i32 = arith.constant 0 : i32
    return %arg1, %arg2 : i32, i32
  }
  func.func @transform_4(%arg0: i32, %arg1: i32, %arg2: i32, %arg3: i32) -> (i32, i32, i32) {
    %c0_i32 = arith.constant 0 : i32
    return %arg0, %arg1, %arg2 : i32, i32, i32
  }
}

</mosaic_0001>

<bundles_post_ra>
// kernel: patch_embedding.1
= control target key start
LH: loop header
LB: loop body
LE: loop exit
PB: predicated region body
PF: predicated region fallthrough
CT: control target
= control target key end

     0   :  { %9 = vsyncpa [#allocation4], 0  ;;  %s1148_s0 = inlined_call_operand.vmem [shape: f32[2,16,128], index: 0, kind: input, shape index: {}]   ;;  %s1149_s1 = inlined_call_operand.vmem [shape: f32[128,256], index: 1, kind: input, shape index: {}]   ;;  %s1150_s2 = inlined_call_operand.vmem [shape: f32[1,256], index: 2, kind: input, shape index: {}]   ;;  %s1151_s3 = inlined_call_operand.vmem [shape: f32[16,256], index: 3, kind: input, shape index: {}]   ;;  %s1152_s4 = inlined_call_operand.hbm [shape: f32[2,16,256], index: 4, kind: output, shape index: {}]  }
   0x1   :  { %11 = vsyncpa [#allocation4 + $0x1], 0  ;;  %s918_s15 = smov 0   ;;  %s920_s16 = smov 0  }
   0x2   :  { %s922_s17 = smov 0   ;;  %s924_s18 = smov 0  }
   0x3   :  { %s926_s19 = smov 0   ;;  %s928_s20 = smov 0  }
   0x4 LB: > { %s685_s21 = sadd.s32 4294967295, %s887_s20   ;;  %s686_s22 = sadd.s32 4294967294, %s887_s20   ;;  %s887_s20 = sphi %s928_s20, %s17_s20   ;;  %s883_s19 = sphi %s926_s19, %s1159_s19   ;;  %s879_s18 = sphi %s924_s18, %s1158_s18   ;;  %s875_s17 = sphi %s922_s17, %s1157_s17   ;;  %s871_s16 = sphi %s920_s16, %s1156_s16   ;;  %s867_s15 = sphi %s918_s15, %s1155_s15  }
   0x5   : > { %s43_s23 = sadd.s32 1, %s883_s19  ;;  %s166_s24 = sadd.s32 1, %s875_s17 }
   0x6   : > { %p45_p0 = scmp.ge.s32.totalorder %s43_s23, 2  ;;  %p176_p1 = scmp.ne.s32.totalorder %s875_s17, %s871_s16 }
   0x7   : > { %p177_p2 = scmp.eq.s32.totalorder %s685_s21, 1  ;;  %p182_p3 = scmp.ne.s32.totalorder %s871_s16, %s867_s15 }
   0x8   : > { %s1161_s23 = smov (%p45_p0, %s43_s23), 0  ;;  %p183_p5 = scmp.eq.s32.totalorder %s686_s22, 1 }
   0x9   : > { %p958_p4 = por %p177_p2, %p176_p1  ;;  %s159_s26 = ssub.s32 %s883_s19, %s1161_s23 }
   0xa   : > { %p692_p6 = scmp.ge.s32.totalorder %s887_s20, 1  ;;  %p164_p7 = scmp.eq.s32.totalorder %s159_s26, 0 }
   0xb   : > { %p965_p8 = por %p183_p5, %p182_p3  ;;  %p255_p9 = scmp.lt.s32.totalorder %s887_s20, 3 }
   0xc   : > { %s971_s28 = scalar_select %p164_p7, %s875_s17, %s166_s24  }
   0xd   : > { %p256_p10 = pnand %p692_p6, %p255_p9 }
   0xe   : > { %v371_v0 = vld [vmem:[%s1149_s1 + $0x8] sm:$0xff] (!%p256_p10)  ;;  %v373_v1 = vld [vmem:[%s1149_s1 + $0x18] sm:$0xff] (!%p256_p10)  ;;  %v370_v2 = vld [vmem:[%s1149_s1] sm:$0xff] (!%p256_p10)  ;;  %v889_v7 = vmov (!%p256_p10), 0.0   ;;  %p313_p11 = scmp.lt.s32.totalorder (!%p256_p10), %s879_s18, 1  ;;  %v496_v51 = vlaneseq (!%p256_p10)  ;;  %s309_s8 = sand.u32 (!%p256_p10), 1, %s871_s16  }
   0xf   : > { %259 = sbr.rel (%p256_p10) target bundleno = 281 (0x119), region = 36  ;;  %v703_v3 = vpack.c.bf16 (!%p256_p10), %v373_v1, %v371_v0  ;;  %v372_v4 = vld [vmem:[%s1149_s1 + $0x10] sm:$0xff] (!%p256_p10)  ;;  %v375_v5 = vld [vmem:[%s1149_s1 + $0x28] sm:$0xff] (!%p256_p10)  ;;  %v377_v6 = vld [vmem:[%s1149_s1 + $0x38] sm:$0xff] (!%p256_p10)  ;;  %466 = vmatprep.mubr.f32.mxu0 (!%p256_p10), %v889_v7  ;;  %472 = vmatprep.mubr.f32.mxu1 (!%p256_p10), %v889_v7  ;;  %s693_s9 = sshll.u32 (!%p256_p10), %s309_s8, 5 }
  0x10   : > { %v705_v8 = vpack.c.bf16 (!%p256_p10), %v372_v4, %v370_v2  ;;  %v707_v9 = vpack.c.bf16 (!%p256_p10), %v377_v6, %v375_v5  ;;  %v374_v10 = vld [vmem:[%s1149_s1 + $0x20] sm:$0xff] (!%p256_p10)  ;;  %v376_v11 = vld [vmem:[%s1149_s1 + $0x30] sm:$0xff] (!%p256_p10)  ;;  %v379_v12 = vld [vmem:[%s1149_s1 + $0x48] sm:$0xff] (!%p256_p10)  ;;  %v497_v52 = vshrl.u32 (!%p256_p10), %v496_v51, 7  ;;  %s311_s14 = scalar_lea.vmem (!%p256_p10), [#allocation3], %s693_s9  ;;  %s702_s26 = sshll.u32 (!%p256_p10), %s879_s18, 9 }
  0x11   : > { %704 = vmatprep.subr.bf16.mxu0 (!%p256_p10), %v703_v3  ;;  %735 = vmatprep.subr.bf16.mxu1 (!%p256_p10), %v703_v3  ;;  %v381_v13 = vld [vmem:[%s1149_s1 + $0x58] sm:$0xff] (!%p256_p10)  ;;  %v709_v14 = vpack.c.bf16 (!%p256_p10), %v376_v11, %v374_v10  ;;  %v378_v16 = vld [vmem:[%s1149_s1 + $0x40] sm:$0xff] (!%p256_p10)  ;;  %v380_v17 = vld [vmem:[%s1149_s1 + $0x50] sm:$0xff] (!%p256_p10)  ;;  %s1098_s9 = scalar_lea.hbm (!%p256_p10), %s1152_s4, %s702_s26  ;;  %s1102_s10 = scalar_lea.sflag (!%p256_p10), [#allocation4], %s309_s8 }
  0x12   : > { %706 = vmatpush1.bf16.msra.mxu0 (!%p256_p10), %v705_v8  ;;  %743 = vmatpush1.bf16.msra.mxu1 (!%p256_p10), %v705_v8  ;;  %v711_v15 = vpack.c.bf16 (!%p256_p10), %v381_v13, %v379_v12  ;;  %v383_v18 = vld [vmem:[%s1149_s1 + $0x68] sm:$0xff] (!%p256_p10)  ;;  %v385_v19 = vld [vmem:[%s1149_s1 + $0x78] sm:$0xff] (!%p256_p10)  ;;  %v713_v20 = vpack.c.bf16 (!%p256_p10), %v380_v17, %v378_v16  ;;  %v382_v22 = vld [vmem:[%s1149_s1 + $0x60] sm:$0xff] (!%p256_p10)  ;;  %v498_v53 = vsub.s32 (!%p256_p10), 0, %v497_v52  ;;  %v502_v55 = vsub.s32 (!%p256_p10), 1, %v497_v52  ;;  %s890_s12 = smov (!%p256_p10), [#allocation3]  }
  0x13   : > { %708 = vmatprep.subr.bf16.mxu0 (!%p256_p10), %v707_v9  ;;  %736 = vmatprep.subr.bf16.mxu1 (!%p256_p10), %v707_v9  ;;  %v715_v21 = vpack.c.bf16 (!%p256_p10), %v385_v19, %v383_v18  ;;  %v384_v23 = vld [vmem:[%s1149_s1 + $0x70] sm:$0xff] (!%p256_p10)  ;;  %v387_v24 = vld [vmem:[%s1149_s1 + $0x88] sm:$0xff] (!%p256_p10)  ;;  %v389_v25 = vld [vmem:[%s1149_s1 + $0x98] sm:$0xff] (!%p256_p10)  ;;  %s813_s13 = sshll.u32 (!%p256_p10), %s890_s12, 4  ;;  %s814_s13 = int_to_ptr.vmem [resolvable:$false] %s813_s13 }
  0x14   : > { %v717_v26 = vpack.c.bf16 (!%p256_p10), %v384_v23, %v382_v22  ;;  %v719_v27 = vpack.c.bf16 (!%p256_p10), %v389_v25, %v387_v24  ;;  %v386_v28 = vld [vmem:[%s1149_s1 + $0x80] sm:$0xff] (!%p256_p10)  ;;  %v388_v29 = vld [vmem:[%s1149_s1 + $0x90] sm:$0xff] (!%p256_p10)  ;;  %v391_v30 = vld [vmem:[%s1149_s1 + $0xa8] sm:$0xff] (!%p256_p10)  ;;  %s815_s22 = scalar_lea.vmem (!%p256_p10), %s814_s13, 1024 }
  0x15   : > { %v393_v31 = vld [vmem:[%s1149_s1 + $0xb8] sm:$0xff] (!%p256_p10)  ;;  %v721_v32 = vpack.c.bf16 (!%p256_p10), %v388_v29, %v386_v28  ;;  %v390_v34 = vld [vmem:[%s1149_s1 + $0xa0] sm:$0xff] (!%p256_p10)  ;;  %v392_v35 = vld [vmem:[%s1149_s1 + $0xb0] sm:$0xff] (!%p256_p10) }
  0x16   : > { %710 = vmatpush1.bf16.msra.mxu0 %v709_v14  ;;  %744 = vmatpush1.bf16.msra.mxu1 %v709_v14  ;;  %v723_v33 = vpack.c.bf16 %v393_v31, %v391_v30  ;;  %v395_v36 = vld [vmem:[%s1149_s1 + $0xc8] sm:$0xff]  ;;  %v397_v37 = vld [vmem:[%s1149_s1 + $0xd8] sm:$0xff]  ;;  %v725_v38 = vpack.c.bf16 %v392_v35, %v390_v34  ;;  %v394_v40 = vld [vmem:[%s1149_s1 + $0xc0] sm:$0xff]  ;;  %s314_s21 = scalar_select %p313_p11, %s879_s18, 1 }
  0x17   : > { %712 = vmatprep.subr.bf16.mxu0 %v711_v15  ;;  %737 = vmatprep.subr.bf16.mxu1 %v711_v15  ;;  %v727_v39 = vpack.c.bf16 %v397_v37, %v395_v36  ;;  %v396_v41 = vld [vmem:[%s1149_s1 + $0xd0] sm:$0xff]  ;;  %v399_v42 = vld [vmem:[%s1149_s1 + $0xe8] sm:$0xff]  ;;  %v401_v43 = vld [vmem:[%s1149_s1 + $0xf8] sm:$0xff] }
  0x18   : > { %v729_v44 = vpack.c.bf16 %v396_v41, %v394_v40  ;;  %v731_v45 = vpack.c.bf16 %v401_v43, %v399_v42  ;;  %v398_v46 = vld [vmem:[%s1149_s1 + $0xe0] sm:$0xff]  ;;  %v400_v47 = vld [vmem:[%s1149_s1 + $0xf0] sm:$0xff]  ;;  %s701_s30 = sshll.u32 %s314_s21, 4  ;;  %s541_s21 = sshll.u32 %s311_s14, 4  ;;  %v511_v1 = vld [vmem:[%s1151_s3 + $0x8] sm:$0xff]  ;;  %s1093_s21 = int_to_ptr.vmem [resolvable:$true] %s541_s21 }
  0x19   : > { %v733_v48 = vpack.c.bf16 %v400_v47, %v398_v46  ;;  %s323_s7 = scalar_lea.vmem %s1148_s0, %s701_s30  ;;  %v494_v54 = vld [vmem:[%s1150_s2] sm:$0x3]  ;;  %v512_v61 = vld [vmem:[%s1151_s3 + $0x10] sm:$0xff]  ;;  %v513_v3 = vld [vmem:[%s1151_s3 + $0x18] sm:$0xff]  ;;  %s809_s11 = scalar_lea.vmem %s1093_s21, 512 }
  0x1a   : > { %714 = vmatpush1.bf16.msra.mxu0 %v713_v20  ;;  %745 = vmatpush1.bf16.msra.mxu1 %v713_v20  ;;  %v368_v49 = vld [vmem:[%s323_s7] sm:$0xff]  ;;  %v369_v50 = vld [vmem:[%s323_s7 + $0x8] sm:$0xff]  ;;  %v499_v56 = vrot.slane %v494_v54, %v498_v53  ;;  %v503_v57 = vrot.slane %v494_v54, %v502_v55  ;;  %p810_p12 = scmp.ne.s32.totalorder %s1093_s21, %s809_s11  ;;  %p816_p1 = scmp.lt.s32.totalorder %s1093_s21, %s814_s13 }
  0x1b   : > { %716 = vmatprep.subr.bf16.mxu0 %v715_v21  ;;  %738 = vmatprep.subr.bf16.mxu1 %v715_v21  ;;  %v510_v59 = vld [vmem:[%s1151_s3] sm:$0xff]  ;;  %p817_p2 = scmp.lt.s32.totalorder %s815_s22, %s809_s11 }
  0x1c   : > { %p811_p13 = pnand %p810_p12, %p958_p4 }
  0x1d   : > { %p818_p3 = por %p817_p2, %p816_p1 }
  0x1e   : > { %718 = vmatpush1.bf16.msra.mxu0 %v717_v26  ;;  %746 = vmatpush1.bf16.msra.mxu1 %v717_v26  ;;  %p812_p0 = pneg %p811_p13 }
  0x1f   : > { %720 = vmatprep.subr.bf16.mxu0 %v719_v27  ;;  %739 = vmatprep.subr.bf16.mxu1 %v719_v27 }
  0x20   : > { %p819_p5 = pnand %p818_p3, %p812_p0 }
  0x22   : > { %722 = vmatpush1.bf16.msra.mxu0 %v721_v32  ;;  %747 = vmatpush1.bf16.msra.mxu1 %v721_v32 }
  0x23   : > { %724 = vmatprep.subr.bf16.mxu0 %v723_v33  ;;  %740 = vmatprep.subr.bf16.mxu1 %v723_v33 }
  0x26   : > { %726 = vmatpush1.bf16.msra.mxu0 %v725_v38  ;;  %748 = vmatpush1.bf16.msra.mxu1 %v725_v38 }
  0x27   : > { %728 = vmatprep.subr.bf16.mxu0 %v727_v39  ;;  %741 = vmatprep.subr.bf16.mxu1 %v727_v39 }
  0x2a   : > { %730 = vmatpush1.bf16.msra.mxu0 %v729_v44  ;;  %749 = vmatpush1.bf16.msra.mxu1 %v729_v44 }
  0x2b   : > { %732 = vmatprep.subr.bf16.mxu0 %v731_v45  ;;  %742 = vmatprep.subr.bf16.mxu1 %v731_v45 }
  0x2e   : > { %734 = vmatpush1.bf16.msra.mxu0 %v733_v48  ;;  %750 = vmatpush1.bf16.msra.mxu1 %v733_v48 }
  0x31   : > { %467 = vmatmul.mubr.f32.vlgmr.msra.gmra.mrb[0].mxu0 %v368_v49  ;;  %473 = vmatmul.mubr.f32.vlgmr.msra.gmra.mrb[0].mxu1 %v369_v50 }
 0x104   : > { %v468_v58 = vpop.f32.mrb[0].mxu0  ;;  %v474_v60 = vpop.f32.mrb[0].mxu1 }
 0x105   : > { %v506_v62 = vadd.f32 %v499_v56, %v468_v58  ;;  %v508_v63 = vadd.f32 %v499_v56, %v474_v60  ;;  %v470_v0 = vpop.f32.mrb[1].mxu0  ;;  %v476_v2 = vpop.f32.mrb[1].mxu1 }
 0x106   : > { %v507_v4 = vadd.f32 %v503_v57, %v470_v0  ;;  %v509_v5 = vadd.f32 %v503_v57, %v476_v2 }
 0x107   : > { %v514_v6 = vadd.f32 %v510_v59, %v506_v62  ;;  %v516_v7 = vadd.f32 %v512_v61, %v508_v63 }
 0x108   : > { %v515_v8 = vadd.f32 %v511_v1, %v507_v4  ;;  %v517_v9 = vadd.f32 %v513_v3, %v509_v5 }
 0x109   : > { %518 = vst [vmem:[%s311_s14] sm:$0xff] %v514_v6  ;;  %520 = vst [vmem:[%s311_s14 + $0x10] sm:$0xff] %v516_v7 }
 0x10a   : > { %519 = vst [vmem:[%s311_s14 + $0x8] sm:$0xff] %v515_v8  ;;  %521 = vst [vmem:[%s311_s14 + $0x18] sm:$0xff] %v517_v9 }
 0x10b   : > { %822 = shalt.err (!%p819_p5)
}
 0x10c   : > { %s823_s8 = scalar_lea.hbm %s1098_s9, 512  ;;  %s827_s26 = scalar_lea.hbm %s1152_s4, 1024 }
 0x10d   : > { %p824_p6 = scmp.ne.s32.totalorder %s1098_s9, %s823_s8  ;;  %p828_p10 = scmp.lt.u32.totalorder %s1098_s9, %s1152_s4 }
 0x10e   : > { %p829_p11 = scmp.lt.u32.totalorder %s827_s26, %s823_s8  ;;  %p831_p13 = scmp.lt.u32.totalorder %s823_s8, %s1098_s9 }
 0x10f   : > { %p825_p7 = pnand %p824_p6, %p958_p4 }
 0x110   : > { %p830_p12 = por %p829_p11, %p828_p10 }
 0x111   : > { %p826_p9 = pneg %p825_p7 }
 0x112   : > { %p832_p0 = por %p831_p13, %p830_p12 }
 0x114   : > { %p833_p1 = pnand %p832_p0, %p826_p9 }
 0x116   : > { %836 = shalt.err (!%p833_p1)
}
 0x117   : > { %s891_s5 = smov 256   ;;  %s892_s6 = smov 16  }
 0x118   : > { %751 = dma.vmem_to_hbm [thread:$0]  (%p958_p4), %s1093_s21, 512, %s1098_s9, %s1102_s10, %s891_s5, %s891_s5, %s892_s6  }
 0x119 PF: > { %p757_p2 = scmp.ge.s32.totalorder %s887_s20, 2  ;;  %s556_s18 = sand.u32 1, %s867_s15  }
 0x11a   : > { %s557_s7 = scalar_lea.sflag [#allocation4], %s556_s18 }
 0x11b   : > { %p754_p3 = pnand %p757_p2, %p965_p8 }
 0x11d   : > { %862 = dma.done.wait (!%p754_p3), %s557_s7, 512  }
 0x11e   : > { %864 = vsyncadd (!%p754_p3), %s557_s7, 4294966784  ;;  %s17_s20 = sadd.s32 1, %s887_s20   ;;  %s1155_s15 = smov %s871_s16 }
 0x11f   : > { %p14_p5 = scmp.ge.s32.totalorder %s17_s20, 4   ;;  %s1156_s16 = smov %s875_s17 }
 0x120   : > { %s1157_s17 = smov %s971_s28  ;;  %s1158_s18 = smov %s883_s19 }
 0x121   : > { %s1159_s19 = smov %s1161_s23  ;;  %16 = sbr.rel (!%p14_p5) target bundleno = 4 (0x4), region = 88 }
 0x128   :  { %562 = vsyncpa [#allocation4], 1 }
 0x129   :  { %564 = vsyncpa [#allocation4 + $0x1], 1 }

</bundles_post_ra>
